<compile_context>
chip_gen: v5e
topology: v5e:2x2
jax: 0.10.0
libtpu: 0.0.40
codegen_flags: <defaults>
</compile_context>

<pallas_src>
import functools
import math

import jax
import jax.numpy as jnp
from jax.experimental import pallas as pl
from jax.experimental.pallas import tpu as pltpu

D_IN = 360
DIMS = [D_IN + 2, 256, 128]
BN_EPS = 1e-5


def gen_grid(rate):
    """JAX port of gen_grid: returns (rate, 2) float32."""
    sqrted = int(math.sqrt(rate)) + 1
    num_x, num_y = 1, rate
    for i in reversed(range(1, sqrted + 1)):
        if rate % i == 0:
            num_x = i
            num_y = rate // i
            break
    grid_x = jnp.linspace(-0.2, 0.2, num_x, dtype=jnp.float32)
    grid_y = jnp.linspace(-0.2, 0.2, num_y, dtype=jnp.float32)
    x, y = jnp.meshgrid(grid_x, grid_y, indexing="ij")   # torch default 'ij'
    return jnp.stack([x, y], axis=-1).reshape(-1, 2)


# --------------------------------------------------------------------------
# Kernel
# --------------------------------------------------------------------------
def _dup_up_kernel(x_ref, w1_ref, t1_ref, w2_ref, t2_ref, out_ref, *, ncl_out):
    # x_ref : (1, TN, 360)  original coarse rows (f32 in HBM, cast in VMEM)
    # w1_ref: (360, 256)    BN-scale-folded weights (compute dtype)
    # t1_ref: (1, 1, 256)   per-repeat shift (conv bias + BN + grid offset), f32
    # w2_ref: (256, 128)    BN-scale-folded weights (compute dtype)
    # t2_ref: (1, 128)      shift, f32
    # out   : (1, 128, TN) if ncl_out else (1, TN, 128)
    x = x_ref[0].astype(w1_ref.dtype)                                 # (TN, 360)
    h = jnp.dot(x, w1_ref[...], preferred_element_type=jnp.float32)   # (TN, 256)
    h = jnp.maximum(h + t1_ref[0], 0.0)                               # bias/BN + ReLU
    y = jnp.dot(h.astype(w2_ref.dtype), w2_ref[...],
                preferred_element_type=jnp.float32)                   # (TN, 128)
    y = y + t2_ref[...]
    if ncl_out:
        out_ref[0] = y.T.astype(out_ref.dtype)                        # (128, TN)
    else:
        out_ref[0] = y.astype(out_ref.dtype)                          # (TN, 128)


# --------------------------------------------------------------------------
# Wrapper
# --------------------------------------------------------------------------
def _pick_tile(n, cap=1024):
    """Largest row tile that divides N: prefer multiples of 128, then of 8."""
    for t in (1024, 512, 256, 128):
        if t <= cap and n % t == 0:
            return t
    t = (min(n, cap) // 8) * 8
    while t >= 8:
        if n % t == 0:
            return t
        t -= 8
    return n


def _fold_params(params, rate, compute_dtype):
    """Fold Conv1d bias + eval-mode BN (+ grid offsets) into weights/shifts."""
    c1, c2 = DIMS[1], DIMS[2]
    s1 = params["bn1_g"] * jax.lax.rsqrt(params["bn1_v"] + BN_EPS)
    t1 = (params["b1"] - params["bn1_m"]) * s1 + params["bn1_b"]        # (256,)
    g = gen_grid(rate)                                                  # (rate, 2)
    # grid-offset channels folded analytically into a per-repeat shift
    t1_all = t1[None, :] + (g @ params["w1"][D_IN:]) * s1[None, :]      # (rate, 256)
    w1_f = (params["w1"][:D_IN] * s1[None, :]).astype(compute_dtype)    # (360, 256)

    s2 = params["bn2_g"] * jax.lax.rsqrt(params["bn2_v"] + BN_EPS)
    t2 = (params["b2"] - params["bn2_m"]) * s2 + params["bn2_b"]        # (128,)
    w2_f = (params["w2"] * s2[None, :]).astype(compute_dtype)           # (256, 128)

    return (w1_f,
            t1_all.reshape(rate, 1, c1).astype(jnp.float32),
            w2_f,
            t2.reshape(1, c2).astype(jnp.float32))


def duplicate_up_forward(coarse_feature, params, rate, *,
                         compute_dtype=jnp.bfloat16, block_n=None):
    """coarse_feature: (B, N, 360) float32 -> (B, 128, N*rate) float32."""
    B, N, d = coarse_feature.shape
    assert d == D_IN
    M = N * rate
    c1, c2 = DIMS[1], DIMS[2]

    TN = block_n if block_n is not None else _pick_tile(N)
    assert N % TN == 0 and (TN % 8 == 0 or TN == N)
    n_tiles = N // TN
    # Lane-dense NCL stores only when the column tile is a multiple of 128.
    ncl = (TN % 128 == 0)

    w1_f, t1_all, w2_f, t2 = _fold_params(params, rate, compute_dtype)

    in_specs = [
        # same coarse row-tile for every repeat r (innermost axis) -> no re-DMA
        pl.BlockSpec((1, TN, D_IN), lambda b, t, r: (b, t, 0)),
        pl.BlockSpec((D_IN, c1), lambda b, t, r: (0, 0)),
        pl.BlockSpec((1, 1, c1), lambda b, t, r: (r, 0, 0)),
        pl.BlockSpec((c1, c2), lambda b, t, r: (0, 0)),
        pl.BlockSpec((1, c2), lambda b, t, r: (0, 0)),
    ]
    if ncl:
        out_shape = jax.ShapeDtypeStruct((B, c2, M), jnp.float32)
        out_spec = pl.BlockSpec((1, c2, TN),
                                lambda b, t, r: (b, 0, r * n_tiles + t))
    else:
        out_shape = jax.ShapeDtypeStruct((B, M, c2), jnp.float32)
        out_spec = pl.BlockSpec((1, TN, c2),
                                lambda b, t, r: (b, r * n_tiles + t, 0))

    out = pl.pallas_call(
        functools.partial(_dup_up_kernel, ncl_out=ncl),
        out_shape=out_shape,
        grid=(B, n_tiles, rate),
        in_specs=in_specs,
        out_specs=out_spec,
        compiler_params=pltpu.CompilerParams(
            dimension_semantics=("parallel", "parallel", "arbitrary"),
            vmem_limit_bytes=48 * 1024 * 1024),
    )(coarse_feature, w1_f, t1_all, w2_f, t2)

    if not ncl:
        # tiny-N fallback (e.g. demo shapes): transpose to NCL in the wrapper
        out = jnp.transpose(out, (0, 2, 1))
    return out
    # TODO(synk): for very small N one could flatten B into the row axis so
    # each MXU call sees >=256 rows; not needed at realistic N.


# --------------------------------------------------------------------------
# Parameters / references
# --------------------------------------------------------------------------
def init_params(key):
    """Deterministic synthetic parameters matching the module's shapes."""
    ks = jax.random.split(key, 8)
    c0, c1, c2 = DIMS
    # Conv1d(c0, c1, k=1): weight (c1, c0, 1) -> stored transposed as (c0, c1)
    w1 = jax.random.normal(ks[0], (c0, c1), jnp.float32) / math.sqrt(c0)
    b1 = jax.random.normal(ks[1], (c1,), jnp.float32) * 0.01
    w2 = jax.random.normal(ks[2], (c1, c2), jnp.float32) / math.sqrt(c1)
    b2 = jax.random.normal(ks[3], (c2,), jnp.float32) * 0.01
    return {
        "w1": w1, "b1": b1,
        "bn1_g": 1.0 + 0.1 * jax.random.normal(ks[4], (c1,), jnp.float32),
        "bn1_b": 0.01 * jax.random.normal(ks[5], (c1,), jnp.float32),
        "bn1_m": jnp.zeros((c1,), jnp.float32),
        "bn1_v": jnp.ones((c1,), jnp.float32),
        "w2": w2, "b2": b2,
        "bn2_g": 1.0 + 0.1 * jax.random.normal(ks[6], (c2,), jnp.float32),
        "bn2_b": 0.01 * jax.random.normal(ks[7], (c2,), jnp.float32),
        "bn2_m": jnp.zeros((c2,), jnp.float32),
        "bn2_v": jnp.ones((c2,), jnp.float32),
    }
    # TODO(synk): BatchNorm1d is evaluated in eval mode (running stats); the
    # PyTorch module in train mode would use batch statistics instead.


def _reference_f32(coarse_feature, params, rate):
    """Pure-JAX f32 reference mirroring the PyTorch forward."""
    B, N, _ = coarse_feature.shape
    M = N * rate
    feat = jnp.tile(coarse_feature, (1, rate, 1))
    g = jnp.broadcast_to(jnp.repeat(gen_grid(rate), N, axis=0)[None], (B, M, 2))
    x = jnp.concatenate([feat, g], axis=-1)
    h = x @ params["w1"] + params["b1"]
    h = (h - params["bn1_m"]) * jax.lax.rsqrt(params["bn1_v"] + BN_EPS) \
        * params["bn1_g"] + params["bn1_b"]
    h = jnp.maximum(h, 0.0)
    y = h @ params["w2"] + params["b2"]
    y = (y - params["bn2_m"]) * jax.lax.rsqrt(params["bn2_v"] + BN_EPS) \
        * params["bn2_g"] + params["bn2_b"]
    return jnp.transpose(y, (0, 2, 1))


def _reference_folded(coarse_feature, params, rate, compute_dtype):
    """Reference that reproduces the kernel's folded / mixed-precision math."""
    B, N, _ = coarse_feature.shape
    c1, c2 = DIMS[1], DIMS[2]
    w1_f, t1_all, w2_f, t2 = _fold_params(params, rate, compute_dtype)
    x = coarse_feature.astype(compute_dtype)
    h = jnp.dot(x, w1_f, preferred_element_type=jnp.float32)          # (B,N,256)
    h = h[:, None] + t1_all[:, 0][None, :, None, :]                   # (B,rate,N,256)
    h = jnp.maximum(h, 0.0)
    y = jnp.dot(h.astype(compute_dtype), w2_f,
                preferred_element_type=jnp.float32) + t2              # (B,rate,N,128)
    y = y.reshape(B, rate * N, c2)
    return jnp.transpose(y, (0, 2, 1))


if __name__ == "__main__":
    key = jax.random.PRNGKey(0)
    k_in, k_par, k_in2 = jax.random.split(key, 3)
    params = init_params(k_par)

    # --- test 1: small shapes, f32 compute (fallback output layout path) ---
    B, N, rate = 2, 16, 4
    coarse = jax.random.normal(k_in, (B, N, D_IN), jnp.float32)
    out = duplicate_up_forward(coarse, params, rate, compute_dtype=jnp.float32)
    out = jax.block_until_ready(out)
    assert out.shape == (B, DIMS[2], N * rate), out.shape
    ref = jax.block_until_ready(_reference_f32(coarse, params, rate))
    assert jnp.allclose(out, ref, atol=5e-4, rtol=5e-4)

    # --- test 2: N multiple of 128, bf16 MXU operands (direct NCL path) ---
    B2, N2, rate2 = 2, 128, 4
    coarse2 = jax.random.normal(k_in2, (B2, N2, D_IN), jnp.float32)
    out2 = duplicate_up_forward(coarse2, params, rate2,
                                compute_dtype=jnp.bfloat16)
    out2 = jax.block_until_ready(out2)
    assert out2.shape == (B2, DIMS[2], N2 * rate2), out2.shape
    ref2_bf16 = jax.block_until_ready(
        _reference_folded(coarse2, params, rate2, jnp.bfloat16))
    assert jnp.allclose(out2, ref2_bf16, atol=1e-2, rtol=1e-2)
    ref2_f32 = jax.block_until_ready(_reference_f32(coarse2, params, rate2))
    assert jnp.allclose(out2, ref2_f32, atol=1e-1, rtol=1e-1)

    print("KERNEL_OK")
</pallas_src>

<mosaic_0001>
module attributes {stable_mosaic.version = 11 : i64} {
  func.func @_dup_up_kernel(%arg0: i32, %arg1: i32, %arg2: i32, %arg3: memref<1x16x360xf32, #tpu.memory_space<vmem>>, %arg4: memref<360x256xf32, #tpu.memory_space<vmem>>, %arg5: memref<1x1x256xf32, #tpu.memory_space<vmem>>, %arg6: memref<256x128xf32, #tpu.memory_space<vmem>>, %arg7: memref<1x128xf32, #tpu.memory_space<vmem>>, %arg8: memref<1x16x128xf32, #tpu.memory_space<vmem>>) attributes {dimension_semantics = [#tpu.dimension_semantics<parallel>, #tpu.dimension_semantics<parallel>, #tpu.dimension_semantics<arbitrary>], iteration_bounds = array<i64: 2, 1, 4>, scalar_prefetch = 0 : i64, scratch_operands = 0 : i64, tpu.core_type = #tpu.core_type<tc>, window_params = [{transform_indices = @transform_0, window_bounds = array<i64: 1, 16, 360>}, {pipeline_mode = #tpu.pipeline_mode<synchronous>, transform_indices = @transform_1, window_bounds = array<i64: 360, 256>}, {transform_indices = @transform_2, window_bounds = array<i64: 1, 1, 256>}, {pipeline_mode = #tpu.pipeline_mode<synchronous>, transform_indices = @transform_3, window_bounds = array<i64: 256, 128>}, {pipeline_mode = #tpu.pipeline_mode<synchronous>, transform_indices = @transform_4, window_bounds = array<i64: 1, 128>}, {transform_indices = @transform_5, window_bounds = array<i64: 1, 16, 128>}]} {
    %c0 = arith.constant 0 : index
    %c0_0 = arith.constant 0 : index
    %c0_1 = arith.constant 0 : index
    %0 = vector.load %arg3[%c0, %c0_0, %c0_1] : memref<1x16x360xf32, #tpu.memory_space<vmem>>, vector<1x16x360xf32>
    %1 = vector.shape_cast %0 : vector<1x16x360xf32> to vector<16x360xf32>
    %c0_2 = arith.constant 0 : index
    %c0_3 = arith.constant 0 : index
    %2 = vector.load %arg4[%c0_2, %c0_3] : memref<360x256xf32, #tpu.memory_space<vmem>>, vector<360x256xf32>
    %cst = arith.constant dense<0.000000e+00> : vector<16x256xf32>
    %3 = tpu.matmul %1, %2, %cst {dimension_numbers = #tpu.dot_dimension_numbers<[1], [0], [0], [1], [0, 0, 1, 1], [], []>} : vector<16x360xf32>, vector<360x256xf32>, vector<16x256xf32> -> vector<16x256xf32>
    %c0_4 = arith.constant 0 : index
    %c0_5 = arith.constant 0 : index
    %c0_6 = arith.constant 0 : index
    %4 = vector.load %arg5[%c0_4, %c0_5, %c0_6] : memref<1x1x256xf32, #tpu.memory_space<vmem>>, vector<1x1x256xf32>
    %5 = vector.shape_cast %4 : vector<1x1x256xf32> to vector<1x256xf32>
    %6 = vector.broadcast %5 : vector<1x256xf32> to vector<16x256xf32>
    %7 = arith.addf %3, %6 : vector<16x256xf32>
    %cst_7 = arith.constant 0.000000e+00 : f32
    %8 = vector.broadcast %cst_7 : f32 to vector<16x256xf32>
    %9 = arith.maximumf %7, %8 : vector<16x256xf32>
    %c0_8 = arith.constant 0 : index
    %c0_9 = arith.constant 0 : index
    %10 = vector.load %arg6[%c0_8, %c0_9] : memref<256x128xf32, #tpu.memory_space<vmem>>, vector<256x128xf32>
    %cst_10 = arith.constant dense<0.000000e+00> : vector<16x128xf32>
    %11 = tpu.matmul %9, %10, %cst_10 {dimension_numbers = #tpu.dot_dimension_numbers<[1], [0], [0], [1], [0, 0, 1, 1], [], []>} : vector<16x256xf32>, vector<256x128xf32>, vector<16x128xf32> -> vector<16x128xf32>
    %c0_11 = arith.constant 0 : index
    %c0_12 = arith.constant 0 : index
    %12 = vector.load %arg7[%c0_11, %c0_12] : memref<1x128xf32, #tpu.memory_space<vmem>>, vector<1x128xf32>
    %13 = vector.broadcast %12 : vector<1x128xf32> to vector<16x128xf32>
    %14 = arith.addf %11, %13 : vector<16x128xf32>
    %c0_13 = arith.constant 0 : index
    %c0_14 = arith.constant 0 : index
    %c0_15 = arith.constant 0 : index
    %15 = vector.load %arg8[%c0_13, %c0_14, %c0_15] : memref<1x16x128xf32, #tpu.memory_space<vmem>>, vector<1x16x128xf32>
    %16 = vector.shape_cast %15 : vector<1x16x128xf32> to vector<16x128xf32>
    %17 = vector.shape_cast %14 : vector<16x128xf32> to vector<1x16x128xf32>
    tpu.vector_store %arg8[%c0_13, %c0_14, %c0_15], %17 {strides = array<i32>} : memref<1x16x128xf32, #tpu.memory_space<vmem>>, vector<1x16x128xf32>,
    return
  }
  func.func @transform_0(%arg0: i32, %arg1: i32, %arg2: i32) -> (i32, i32, i32) {
    %c0_i32 = arith.constant 0 : i32
    %c0_i32_0 = arith.constant 0 : i32
    return %arg0, %arg1, %c0_i32 : i32, i32, i32
  }
  func.func @transform_1(%arg0: i32, %arg1: i32, %arg2: i32) -> (i32, i32) {
    %c0_i32 = arith.constant 0 : i32
    %c0_i32_0 = arith.constant 0 : i32
    %c0_i32_1 = arith.constant 0 : i32
    return %c0_i32, %c0_i32_0 : i32, i32
  }
  func.func @transform_2(%arg0: i32, %arg1: i32, %arg2: i32) -> (i32, i32, i32) {
    %c0_i32 = arith.constant 0 : i32
    %c0_i32_0 = arith.constant 0 : i32
    %c0_i32_1 = arith.constant 0 : i32
    return %arg2, %c0_i32, %c0_i32_0 : i32, i32, i32
  }
  func.func @transform_3(%arg0: i32, %arg1: i32, %arg2: i32) -> (i32, i32) {
    %c0_i32 = arith.constant 0 : i32
    %c0_i32_0 = arith.constant 0 : i32
    %c0_i32_1 = arith.constant 0 : i32
    return %c0_i32, %c0_i32_0 : i32, i32
  }
  func.func @transform_4(%arg0: i32, %arg1: i32, %arg2: i32) -> (i32, i32) {
    %c0_i32 = arith.constant 0 : i32
    %c0_i32_0 = arith.constant 0 : i32
    %c0_i32_1 = arith.constant 0 : i32
    return %c0_i32, %c0_i32_0 : i32, i32
  }
  func.func @transform_5(%arg0: i32, %arg1: i32, %arg2: i32) -> (i32, i32, i32) {
    %c1_i32 = arith.constant 1 : i32
    %0 = arith.muli %arg2, %c1_i32 : i32
    %1 = arith.addi %0, %arg1 : i32
    %c0_i32 = arith.constant 0 : i32
    %c0_i32_0 = arith.constant 0 : i32
    return %arg0, %1, %c0_i32 : i32, i32, i32
  }
}

</mosaic_0001>

<bundles_post_ra>
// kernel: tpu_custom_call.1
= control target key start
LH: loop header
LB: loop body
LE: loop exit
PB: predicated region body
PF: predicated region fallthrough
CT: control target
= control target key end

     0   :  { %s1657_s0 = inlined_call_operand.hbm [shape: f32[2,16,360], index: 0, kind: input, shape index: {}]   ;;  %s1658_s1 = inlined_call_operand.hbm [shape: f32[360,256], index: 1, kind: input, shape index: {}]   ;;  %s1659_s2 = inlined_call_operand.hbm [shape: f32[4,1,256], index: 2, kind: input, shape index: {}]   ;;  %s1660_s3 = inlined_call_operand.hbm [shape: f32[256,128], index: 3, kind: input, shape index: {}]   ;;  %s1661_s4 = inlined_call_operand.vmem [shape: f32[1,128], index: 4, kind: input, shape index: {}]   ;;  %s1662_s5 = inlined_call_operand.hbm [shape: f32[2,64,128], index: 5, kind: output, shape index: {}]  }
   0x1   :  { %1669 = sst [smem:[#allocation22_spill]] %s1657_s0 }
   0x2   :  { %1670 = sst [smem:[#allocation23_spill]] %s1658_s1 }
   0x3   :  { %1671 = sst [smem:[#allocation24_spill]] %s1660_s3 }
   0x4   :  { %1672 = sst [smem:[#allocation25_spill]] %s1661_s4 }
   0x5   :  { %1673 = sst [smem:[#allocation26_spill]] %s1662_s5 }
   0x6   :  { %10 = vsyncpa [#allocation3], 0 }
   0x7   :  { %12 = vsyncpa [#allocation3 + $0x1], 0 }
   0x8   :  { %13 = vsyncpa [#allocation6], 0 }
   0x9   :  { %14 = vsyncpa [#allocation4], 0 }
   0xa   :  { %16 = vsyncpa [#allocation4 + $0x1], 0  ;;  %s1340_s18 = smov 0   ;;  %s1342_s19 = smov 0  }
   0xb   :  { %s1344_s20 = smov 0   ;;  %s1346_s21 = smov 0  }
   0xc   :  { %s1348_s22 = smov 0   ;;  %s1350_s23 = smov 0  }
   0xd   :  { %s1352_s24 = smov 0   ;;  %s1354_s25 = smov 0  }
   0xe   :  { %s1356_s26 = smov 0   ;;  %s1358_s27 = smov 0  }
   0xf   :  { %s1360_s28 = smov 0   ;;  %s1362_s29 = smov 0  }
  0x10   :  { %s1364_s30 = smov 0   ;;  %s1366_s6 = smov 0  }
  0x11 LB: > { %1674 = sst [smem:[#allocation15_spill]] %s1282_s27  ;;  %s1411_s7 = sadd.s32 4294967295, %s1298_s6   ;;  %s1298_s6 = sphi %s1366_s6, %s22_s6   ;;  %s1294_s30 = sphi %s1364_s30, %s1714_s30   ;;  %s1290_s29 = sphi %s1362_s29, %s1713_s29   ;;  %s1286_s28 = sphi %s1360_s28, %s1700_s28   ;;  %s1282_s27 = sphi %s1358_s27, %s1712_s27   ;;  %s1278_s26 = sphi %s1356_s26, %s1711_s26   ;;  %s1274_s25 = sphi %s1354_s25, %s1710_s25   ;;  %s1270_s24 = sphi %s1352_s24, %s1709_s24   ;;  %s1266_s23 = sphi %s1350_s23, %s1708_s23   ;;  %s1262_s22 = sphi %s1348_s22, %s1707_s22   ;;  %s1258_s21 = sphi %s1346_s21, %s1706_s21   ;;  %s1254_s20 = sphi %s1344_s20, %s1705_s20   ;;  %s1250_s19 = sphi %s1342_s19, %s1704_s19   ;;  %s1246_s18 = sphi %s1340_s18, %s1703_s18  }
  0x12   : > { %1675 = sst [smem:[#allocation16_spill]] %s1286_s28  ;;  %p834_p0 = scmp.ge.s32.totalorder %s1298_s6, 1 }
  0x13   : > { %1676 = sst [smem:[#allocation17_spill]] %s1294_s30  ;;  %p64_p1 = scmp.eq.s32.totalorder %s1411_s7, 0 }
  0x14   : > { %p180_p2 = scmp.eq.s32.totalorder %s1411_s7, 7  ;;  %p193_p3 = scmp.lt.s32.totalorder %s1298_s6, 9 }
  0x15   : > { %s1677_s1 = sld [smem:[#allocation23_spill]]  ;;  %s1300_s12 = smov [#allocation5]  }
  0x16   : > { %p1420_p4 = pnand %p834_p0, %p193_p3  ;;  %s206_s13 = sshll.u32 %s1300_s12, 4  ;;  %s207_s13 = int_to_ptr.vmem [resolvable:$true] %s206_s13 }
  0x17   : > { %s1301_s15 = smov 256   ;;  %s1302_s16 = smov 16  }
  0x18   : > { %p873_p5 = pneg %p1420_p4  ;;  %p57_p7 = scmp.ne.s32.totalorder %s1278_s26, %s1274_s25 }
  0x19   : > { %p58_p8 = scmp.eq.s32.totalorder %s1298_s6, 0  ;;  %p63_p9 = scmp.ne.s32.totalorder %s1274_s25, %s1270_s24 }
  0x1a   : > { %p1428_p6 = pnand %p873_p5, %p64_p1  ;;  %p893_p10 = scmp.lt.s32.totalorder %s1298_s6, 8 }
  0x1b   : > { %s204_s10 = sshll.u32 %s1677_s1, 4  ;;  %p59_p11 = por %p58_p8, %p57_p7  ;;  %s205_s10 = int_to_ptr.hbm [resolvable:$true] %s204_s10 }
  0x1c   : > { %876 = dma.hbm_to_vmem [thread:$0]  (!%p1428_p6), %s205_s10, 11520, %s207_s13, [#allocation6], %s1301_s15, %s1301_s15, %s1302_s16  }
  0x1d   : > { %s237_s9 = sand.u32 1, %s1298_s6   ;;  %p1447_p12 = por %p64_p1, %p63_p9 }
  0x1e   : > { %s239_s1 = sand.u32 1, %s1278_s26   ;;  %s857_s5 = smul.u32 48, %s1294_s30 }
  0x1f   : > { %s856_s4 = smul.u32 48, %s239_s1  ;;  %p881_p13 = pnand %p893_p10, %p59_p11 }
  0x20   : > { %s1681_s0 = sld [smem:[#allocation22_spill]]  ;;  %s1461_s1 = scalar_lea.sflag [#allocation3], %s237_s9 }
  0x21   : > { %s241_s24 = scalar_lea.vmem [#allocation2], %s856_s4  ;;  %s1682_s3 = sld [smem:[#allocation24_spill]] }
  0x22   : > { %s252_s8 = sshll.u32 %s241_s24, 4  ;;  %s1304_s10 = smov 24   ;;  %s253_s8 = int_to_ptr.vmem [resolvable:$true] %s252_s8 }
  0x23   : > { %s1305_s4 = smov [#allocation8]   ;;  %s1306_s28 = smov 128  }
  0x24   : > { %s220_s13 = sshll.u32 %s1305_s4, 4  ;;  %s1307_s17 = smov 8   ;;  %s221_s13 = int_to_ptr.vmem [resolvable:$true] %s220_s13 }
  0x25   : > { %s833_s9 = sadd.s32 4294967294, %s1298_s6   ;;  %p104_p3 = scmp.ne.s32.totalorder %s1266_s23, %s1262_s22 }
  0x26   : > { %s249_s15 = scalar_lea.hbm %s1681_s0, %s857_s5  ;;  %s1303_s5 = smov 384  }
  0x27   : > { %s250_s16 = sshll.u32 %s249_s15, 4  ;;  %s218_s27 = sshll.u32 %s1682_s3, 4  ;;  %s251_s16 = int_to_ptr.hbm [resolvable:$true] %s250_s16  ;;  %s219_s27 = int_to_ptr.hbm [resolvable:$true] %s218_s27 }
  0x28   : > { %883 = dma.hbm_to_vmem [thread:$0]  (!%p881_p13), %s251_s16, 768, %s253_s8, %s1461_s1, %s1303_s5, %s1303_s5, %s1304_s10  }
  0x29   : > { %879 = dma.hbm_to_vmem [thread:$0]  (!%p1428_p6), %s219_s27, 4096, %s221_s13, [#allocation6], %s1306_s28, %s1306_s28, %s1307_s17  }
  0x2a   : > { %s34_s15 = sadd.s32 1, %s1290_s29  ;;  %s97_s8 = sadd.s32 1, %s1266_s23 }
  0x2b   : > { %p35_p0 = scmp.ge.s32.totalorder %s34_s15, 4  ;;  %p110_p5 = scmp.ne.s32.totalorder %s1262_s22, %s1258_s21 }
  0x2c   : > { %s1684_s16 = sadd.s32 1, %s1294_s30  ;;  %p1482_p6 = por %p104_p3, %p58_p8 }
  0x2d   : > { %s1716_s15 = smov (%p35_p0, %s34_s15), 0  ;;  %s1718_s16 = smov (!%p35_p0, %s1684_s16), %s1294_s30 }
  0x2e   : > { %1683 = sst [smem:[#allocation18_spill]] %s1716_s15  ;;  %s94_s27 = ssub.s32 %s1290_s29, %s1716_s15 }
  0x2f   : > { %p43_p7 = scmp.ge.s32.totalorder %s1718_s16, 2  ;;  %p95_p9 = scmp.eq.s32.totalorder %s94_s27, 0 }
  0x30   : > { %p1488_p11 = por %p110_p5, %p64_p1  ;;  %s169_s24 = sadd.s32 1, %s1254_s20 }
  0x31   : > { %s1720_s16 = smov (%p43_p7, %s1718_s16), 0  ;;  %p179_p8 = scmp.ne.s32.totalorder %s1254_s20, %s1250_s19 }
  0x32   : > { %1687 = sst [smem:[#allocation19_spill]] %s1720_s16  ;;  %s45_s10 = ssub.s32 %s1294_s30, %s1720_s16 }
  0x33   : > { %s1496_s5 = scalar_select %p95_p9, %s1266_s23, %s97_s8  }
  0x34   : > { %p48_p13 = scmp.eq.s32.totalorder %s45_s10, 0  ;;  %s166_s4 = sor.u32 %s94_s27, %s45_s10 }
  0x35   : > { %1688 = sst [smem:[#allocation20_spill]] %s1496_s5  ;;  %p167_p0 = scmp.eq.s32.totalorder %s166_s4, 0 }
  0x36   : > { %p1504_p3 = por %p180_p2, %p179_p8  ;;  %s1691_s28 = sadd.s32 1, %s1278_s26 }
  0x37   : > { %s1511_s17 = scalar_select %p48_p13, %s1278_s26, %s1691_s28  }
  0x38   : > { %s1689_s13 = scalar_select %p1504_p3, 1, 0 }
  0x39   : > { %s1514_s0 = scalar_select %p167_p0, %s1254_s20, %s169_s24  }
  0x3a   : > { %1690 = sst [smem:[#allocation21_spill]] %s1689_s13  ;;  %p185_p5 = scmp.ne.s32.totalorder %s1250_s19, %s1246_s18 }
  0x3b   : > { %p186_p7 = scmp.eq.s32.totalorder %s833_s9, 7  ;;  %s264_s8 = sand.u32 1, %s1266_s23  }
  0x3c   : > { %s840_s3 = sshll.u32 %s1290_s29, 1  ;;  %s839_s10 = sshll.u32 %s264_s8, 1 }
  0x3d   : > { %p1520_p9 = por %p186_p7, %p185_p5  ;;  %s270_s15 = scalar_lea.hbm %s1659_s2, %s840_s3 }
  0x3e   : > { %s272_s30 = sshll.u32 %s270_s15, 4  ;;  %s266_s5 = scalar_lea.vmem [#allocation7], %s839_s10  ;;  %s273_s30 = int_to_ptr.hbm [resolvable:$true] %s272_s30 }
  0x3f   : > { %s274_s13 = sshll.u32 %s266_s5, 4  ;;  %p884_p2 = pnand %p893_p10, %p1482_p6  ;;  %s275_s13 = int_to_ptr.vmem [resolvable:$true] %s274_s13 }
  0x40   : > { %283 = sbr.rel (%p1420_p4) target bundleno = 421 (0x1a5), region = 40  ;;  %s285_s9 = sand.u32 (!%p1420_p4), 1, %s1411_s7  }
  0x41   : > { %886 = dma.hbm_to_vmem [thread:$0]  (!%p884_p2), %s273_s30, 32, %s275_s13, %s1461_s1  }
  0x42   : > { %s287_s24 = sand.u32 (!%p1420_p4), 1, %s1274_s25   ;;  %s286_s16 = scalar_lea.sflag (!%p1420_p4), [#allocation3], %s285_s9 }
  0x43   : > { %s858_s28 = smul.u32 (!%p1420_p4), 48, %s287_s24 }
  0x45   : > { %s1536_s3 = scalar_lea.vmem [#allocation2], %s858_s28 }
  0x46   : > { %1225 = dma.done.wait (%p1447_p12), %s286_s16, 768  }
  0x47   : > { %1227 = vsyncadd (%p1447_p12), %s286_s16, 4294966528 }
  0x48   : > { %1229 = dma.done.wait (%p64_p1), [#allocation6], 11520  }
  0x49   : > { %1231 = vsyncadd (%p64_p1), [#allocation6], 4294955776  ;;  %s302_s30 = sand.u32 1, %s1262_s22  }
  0x4a   : > { %s1547_s11 = sshll.u32 %s302_s30, 1 }
  0x4b   : > { %s304_s1 = scalar_lea.vmem [#allocation7], %s1547_s11 }
  0x4c   : > { %1233 = dma.done.wait (%p1488_p11), %s286_s16, 32  }
  0x4d   : > { %1235 = vsyncadd (%p1488_p11), %s286_s16, 4294967264 }
  0x4e   : > { %1237 = dma.done.wait (%p64_p1), [#allocation6], 4096  }
  0x4f   : > { %1239 = vsyncadd (%p64_p1), [#allocation6], 4294963200  ;;  %v439_v0 = vld [vmem:[#allocation5 + $0x2c0] sm:$0xff]  ;;  %v437_v1 = vld [vmem:[#allocation5 + $0x2b0] sm:$0xff]  ;;  %vm447_vm0 = vcmask 850944   ;;  %s1693_s7 = sld [smem:[#allocation15_spill]] }
  0x50   : > { %503 = vmatpush.msra.mxu2 %v439_v0  ;;  %v381_v2 = vld [vmem:[#allocation5 + $0xf0] sm:$0xff]  ;;  %v435_v3 = vld [vmem:[#allocation5 + $0x2a0] sm:$0xff]  ;;  %v382_v15 = vld [vmem:[#allocation5 + $0xf8] sm:$0xff]  ;;  %s1694_s12 = sld [smem:[#allocation16_spill]]  ;;  %s339_s21 = sand.u32 1, %s1250_s19  }
  0x51   : > { %454 = vmatpush.msra.mxu0 %v381_v2  ;;  %v379_v4 = vld [vmem:[#allocation5 + $0xe0] sm:$0xff]  ;;  %v377_v5 = vld [vmem:[#allocation5 + $0xd0] sm:$0xff]  ;;  %523 = vmatpush.msra.mxu3 %v382_v15  ;;  %v380_v19 = vld [vmem:[#allocation5 + $0xe8] sm:$0xff]  ;;  %s1695_s8 = sld [smem:[#allocation25_spill]]  ;;  %s845_s4 = sshll.u32 %s339_s21, 4 }
  0x52   : > { %504 = vmatpush.msra.mxu2 %v437_v1  ;;  %v413_v6 = vld [vmem:[#allocation5 + $0x1f0] sm:$0xff]  ;;  %v411_v8 = vld [vmem:[#allocation5 + $0x1e0] sm:$0xff]  ;;  %v378_v22 = vld [vmem:[#allocation5 + $0xd8] sm:$0xff]  ;;  %s1696_s16 = sld [smem:[#allocation26_spill]]  ;;  %s341_s30 = scalar_lea.vmem [#allocation9], %s845_s4 }
  0x53   : > { %v433_v7 = vld [vmem:[#allocation5 + $0x290] sm:$0xff]  ;;  %455 = vmatpush.msra.mxu0 %v379_v4  ;;  %477 = vmatpush.msra.mxu1 %v413_v6  ;;  %v375_v9 = vld [vmem:[#allocation5 + $0xc0] sm:$0xff]  ;;  %v376_v24 = vld [vmem:[#allocation5 + $0xc8] sm:$0xff] }
  0x54   : > { %505 = vmatpush.msra.mxu2 %v435_v3  ;;  %v409_v10 = vld [vmem:[#allocation5 + $0x1d0] sm:$0xff]  ;;  %v431_v11 = vld [vmem:[#allocation5 + $0x280] sm:$0xff]  ;;  %524 = vmatpush.msra.mxu3 %v380_v19  ;;  %v374_v28 = vld [vmem:[#allocation5 + $0xb8] sm:$0xff] }
  0x55   : > { %456 = vmatpush.msra.mxu0 %v377_v5  ;;  %478 = vmatpush.msra.mxu1 %v411_v8  ;;  %v373_v12 = vld [vmem:[#allocation5 + $0xb0] sm:$0xff]  ;;  %v407_v13 = vld [vmem:[#allocation5 + $0x1c0] sm:$0xff]  ;;  %v372_v32 = vld [vmem:[#allocation5 + $0xa8] sm:$0xff]  ;;  %s851_s15 = sshll.u32 %s1693_s7, 1 }
  0x56   : > { %506 = vmatpush.msra.mxu2 %v433_v7  ;;  %v429_v14 = vld [vmem:[#allocation5 + $0x270] sm:$0xff]  ;;  %v371_v16 = vld [vmem:[#allocation5 + $0xa0] sm:$0xff]  ;;  %525 = vmatpush.msra.mxu3 %v378_v22  ;;  %v370_v36 = vld [vmem:[#allocation5 + $0x98] sm:$0xff]  ;;  %s852_s14 = sshll.u32 %s1694_s12, 3  ;;  %s681_s12 = scalar_lea.sflag [#allocation4], %s339_s21 }
  0x57   : > { %457 = vmatpush.msra.mxu0 %v375_v9  ;;  %479 = vmatpush.msra.mxu1 %v409_v10  ;;  %v405_v17 = vld [vmem:[#allocation5 + $0x1b0] sm:$0xff]  ;;  %v427_v18 = vld [vmem:[#allocation5 + $0x260] sm:$0xff]  ;;  %v368_v40 = vld [vmem:[#allocation5 + $0x88] sm:$0xff]  ;;  %s693_s10 = sadd.s32 %s852_s14, %s851_s15 }
  0x58   : > { %507 = vmatpush.msra.mxu2 %v431_v11  ;;  %v369_v20 = vld [vmem:[#allocation5 + $0x90] sm:$0xff]  ;;  %v403_v21 = vld [vmem:[#allocation5 + $0x1a0] sm:$0xff]  ;;  %526 = vmatpush.msra.mxu3 %v376_v24  ;;  %v366_v44 = vld [vmem:[#allocation5 + $0x78] sm:$0xff]  ;;  %s853_s9 = sshll.u32 %s693_s10, 3 }
  0x59   : > { %458 = vmatpush.msra.mxu0 %v373_v12  ;;  %480 = vmatpush.msra.mxu1 %v407_v13  ;;  %v425_v23 = vld [vmem:[#allocation5 + $0x250] sm:$0xff]  ;;  %v367_v25 = vld [vmem:[#allocation5 + $0x80] sm:$0xff]  ;;  %v414_v45 = vld [vmem:[#allocation5 + $0x1f8] sm:$0xff] }
  0x5a   : > { %508 = vmatpush.msra.mxu2 %v429_v14  ;;  %v401_v26 = vld [vmem:[#allocation5 + $0x190] sm:$0xff]  ;;  %v423_v27 = vld [vmem:[#allocation5 + $0x240] sm:$0xff]  ;;  %527 = vmatpush.msra.mxu3 %v374_v28  ;;  %v412_v49 = vld [vmem:[#allocation5 + $0x1e8] sm:$0xff] }
  0x5b   : > { %459 = vmatpush.msra.mxu0 %v371_v16  ;;  %481 = vmatpush.msra.mxu1 %v405_v17  ;;  %v365_v29 = vld [vmem:[#allocation5 + $0x70] sm:$0xff]  ;;  %v399_v30 = vld [vmem:[#allocation5 + $0x180] sm:$0xff]  ;;  %v364_v52 = vld [vmem:[#allocation5 + $0x68] sm:$0xff] }
  0x5c   : > { %509 = vmatpush.msra.mxu2 %v427_v18  ;;  %v421_v31 = vld [vmem:[#allocation5 + $0x230] sm:$0xff]  ;;  %v363_v33 = vld [vmem:[#allocation5 + $0x60] sm:$0xff]  ;;  %528 = vmatpush.msra.mxu3 %v372_v32  ;;  %v410_v53 = vld [vmem:[#allocation5 + $0x1d8] sm:$0xff] }
  0x5d   : > { %460 = vmatpush.msra.mxu0 %v369_v20  ;;  %482 = vmatpush.msra.mxu1 %v403_v21  ;;  %v397_v34 = vld [vmem:[#allocation5 + $0x170] sm:$0xff]  ;;  %v419_v35 = vld [vmem:[#allocation5 + $0x220] sm:$0xff]  ;;  %v362_v56 = vld [vmem:[#allocation5 + $0x58] sm:$0xff] }
  0x5e   : > { %510 = vmatpush.msra.mxu2 %v425_v23  ;;  %v361_v37 = vld [vmem:[#allocation5 + $0x50] sm:$0xff]  ;;  %v395_v38 = vld [vmem:[#allocation5 + $0x160] sm:$0xff]  ;;  %529 = vmatpush.msra.mxu3 %v370_v36  ;;  %v408_v57 = vld [vmem:[#allocation5 + $0x1c8] sm:$0xff] }
  0x5f   : > { %461 = vmatpush.msra.mxu0 %v367_v25  ;;  %483 = vmatpush.msra.mxu1 %v401_v26  ;;  %v417_v39 = vld [vmem:[#allocation5 + $0x210] sm:$0xff]  ;;  %v359_v41 = vld [vmem:[#allocation5 + $0x40] sm:$0xff]  ;;  %v440_v59 = vld [vmem:[#allocation5 + $0x2c8] sm:$0xff] }
  0x60   : > { %511 = vmatpush.msra.mxu2 %v423_v27  ;;  %v393_v42 = vld [vmem:[#allocation5 + $0x150] sm:$0xff]  ;;  %v415_v43 = vld [vmem:[#allocation5 + $0x200] sm:$0xff]  ;;  %530 = vmatpush.msra.mxu3 %v368_v40  ;;  %v406_v61 = vld [vmem:[#allocation5 + $0x1b8] sm:$0xff] }
  0x61   : > { %462 = vmatpush.msra.mxu0 %v365_v29  ;;  %484 = vmatpush.msra.mxu1 %v399_v30  ;;  %v357_v46 = vld [vmem:[#allocation5 + $0x30] sm:$0xff]  ;;  %v391_v47 = vld [vmem:[#allocation5 + $0x140] sm:$0xff]  ;;  %v438_v63 = vld [vmem:[#allocation5 + $0x2b8] sm:$0xff] }
  0x62   : > { %512 = vmatpush.msra.mxu2 %v421_v31  ;;  %v1559_v48 = vld [vmem:[%s1536_s3 + $0x10] sm:$0xff]  ;;  %531 = vmatpush.msra.mxu3 %v366_v44  ;;  %v1564_v62 = vld [vmem:[%s1536_s3] sm:$0xff]  ;;  %v404_v1 = vld [vmem:[#allocation5 + $0x1a8] sm:$0xff] }
  0x63   : > { %463 = vmatpush.msra.mxu0 %v363_v33  ;;  %485 = vmatpush.msra.mxu1 %v397_v34  ;;  %v355_v50 = vld [vmem:[#allocation5 + $0x20] sm:$0xff]  ;;  %v389_v51 = vld [vmem:[#allocation5 + $0x130] sm:$0xff]  ;;  %v1567_v2 = vld [vmem:[%s1536_s3 + $0x8] sm:$0xff] }
  0x64   : > { %513 = vmatpush.msra.mxu2 %v419_v35  ;;  %v353_v54 = vld [vmem:[#allocation5 + $0x10] sm:$0xff]  ;;  %v387_v55 = vld [vmem:[#allocation5 + $0x120] sm:$0xff]  ;;  %532 = vmatpush.msra.mxu3 %v364_v52  ;;  %v436_v3 = vld [vmem:[#allocation5 + $0x2a8] sm:$0xff] }
  0x65   : > { %464 = vmatpush.msra.mxu0 %v361_v37  ;;  %486 = vmatpush.msra.mxu1 %v395_v38  ;;  %v351_v58 = vld [vmem:[#allocation5] sm:$0xff]  ;;  %v385_v60 = vld [vmem:[#allocation5 + $0x110] sm:$0xff]  ;;  %v360_v4 = vld [vmem:[#allocation5 + $0x48] sm:$0xff] }
  0x66   : > { %514 = vmatpush.msra.mxu2 %v417_v39  ;;  %533 = vmatpush.msra.mxu3 %v362_v56  ;;  %v383_v0 = vld [vmem:[#allocation5 + $0x100] sm:$0xff]  ;;  %v402_v5 = vld [vmem:[#allocation5 + $0x198] sm:$0xff]  ;;  %v611_v6 = vld [vmem:[#allocation8 + $0x78] sm:$0xff] }
  0x67   : > { %465 = vmatpush.msra.mxu0 %v359_v41  ;;  %487 = vmatpush.msra.mxu1 %v393_v42  ;;  %v434_v7 = vld [vmem:[#allocation5 + $0x298] sm:$0xff]  ;;  %v400_v9 = vld [vmem:[#allocation5 + $0x188] sm:$0xff]  ;;  %v349_v22 = vld [vmem:[%s1536_s3 + $0x20] sm:$0xff] }
  0x68   : > { %515 = vmatpush.msra.mxu2 %v415_v43  ;;  %v358_v8 = vld [vmem:[#allocation5 + $0x38] sm:$0xff]  ;;  %534 = vmatpush.msra.mxu3 %v360_v4  ;;  %v610_v10 = vld [vmem:[#allocation8 + $0x70] sm:$0xff]  ;;  %v627_v29 = vld [vmem:[#allocation8 + $0xf8] sm:$0xff] }
  0x69   : > { %466 = vmatpush.msra.mxu0 %v357_v46  ;;  %488 = vmatpush.msra.mxu1 %v391_v47  ;;  %v432_v11 = vld [vmem:[#allocation5 + $0x288] sm:$0xff]  ;;  %v398_v13 = vld [vmem:[#allocation5 + $0x178] sm:$0xff] }
  0x6a   : > { %546 = vmatpush.msrb.mxu2 %v414_v45  ;;  %v1572_v12 = vld [vmem:[%s1536_s3 + $0x28] sm:$0xff]  ;;  %535 = vmatpush.msra.mxu3 %v358_v8  ;;  %v348_v18 = vld [vmem:[%s1536_s3 + $0x18] sm:$0xff]  ;;  %s695_s3 = scalar_lea.hbm %s1696_s16, %s853_s9 }
  0x6b   : > { %846 = vmatmul.msk.f32.vlgmr.msra.gmra.mxu2 %vm447_vm0, %v1559_v48  ;;  %467 = vmatpush.msra.mxu0 %v355_v50  ;;  %v356_v14 = vld [vmem:[#allocation5 + $0x28] sm:$0xff]  ;;  %v430_v15 = vld [vmem:[#allocation5 + $0x278] sm:$0xff]  ;;  %s698_s7 = sshll.u32 %s695_s3, 4  ;;  %s699_s7 = int_to_ptr.hbm [resolvable:$true] %s698_s7 }
  0x6c   : > { %547 = vmatpush.msrb.mxu2 %v412_v49  ;;  %489 = vmatpush.msra.mxu1 %v389_v51  ;;  %v609_v16 = vld [vmem:[#allocation8 + $0x68] sm:$0xff]  ;;  %v396_v17 = vld [vmem:[#allocation5 + $0x168] sm:$0xff]  ;;  %v608_v27 = vld [vmem:[#allocation8 + $0x60] sm:$0xff]  ;;  %s1154_s15 = sshra.s32 %s699_s7, 4  ;;  %s1155_s15 = int_to_ptr.hbm [resolvable:$true] %s1154_s15 }
  0x6d   : > { %468 = vmatpush.msra.mxu0 %v353_v54  ;;  %536 = vmatpush.msra.mxu3 %v356_v14  ;;  %v354_v19 = vld [vmem:[#allocation5 + $0x18] sm:$0xff]  ;;  %v428_v20 = vld [vmem:[#allocation5 + $0x268] sm:$0xff]  ;;  %s1156_s14 = scalar_lea.hbm %s1155_s15, 16  ;;  %p1161_p12 = scmp.lt.s32.totalorder %s1155_s15, %s1696_s16 }
  0x6e   : > { %548 = vmatpush.msrb.mxu2 %v410_v53  ;;  %490 = vmatpush.msra.mxu1 %v387_v55  ;;  %v394_v21 = vld [vmem:[#allocation5 + $0x158] sm:$0xff]  ;;  %v352_v23 = vld [vmem:[#allocation5 + $0x8] sm:$0xff]  ;;  %p1157_p1 = scmp.ne.s32.totalorder %s1155_s15, %s1156_s14 }
  0x6f   : > { %469 = vmatpush.msra.mxu0 %v351_v58  ;;  %v426_v24 = vld [vmem:[#allocation5 + $0x258] sm:$0xff]  ;;  %v392_v25 = vld [vmem:[#allocation5 + $0x148] sm:$0xff]  ;;  %537 = vmatpush.msra.mxu3 %v354_v19 }
  0x70   : > { %549 = vmatpush.msrb.mxu2 %v408_v57  ;;  %491 = vmatpush.msra.mxu1 %v385_v60  ;;  %v424_v26 = vld [vmem:[#allocation5 + $0x248] sm:$0xff]  ;;  %v390_v28 = vld [vmem:[#allocation5 + $0x138] sm:$0xff]  ;;  %v441_v60 = vld [vmem:[%s304_s1] sm:$0x3]  ;;  %s696_s1 = sshll.u32 %s341_s30, 4  ;;  %p1158_p4 = pnand %p1157_p1, %p1504_p3  ;;  %s697_s1 = int_to_ptr.vmem [resolvable:$true] %s696_s1 }
  0x71   : > { %572 = vmatpush.msrb.mxu0 %v440_v59  ;;  %538 = vmatpush.msra.mxu3 %v352_v23  ;;  %v422_v30 = vld [vmem:[#allocation5 + $0x238] sm:$0xff]  ;;  %v607_v31 = vld [vmem:[#allocation8 + $0x58] sm:$0xff]  ;;  %v626_v33 = vld [vmem:[#allocation8 + $0xf0] sm:$0xff] }
  0x72   : > { %550 = vmatpush.msrb.mxu2 %v406_v61  ;;  %470 = vmatmul.f32.vlgmr.msra.gmra.mxu0 %v1564_v62  ;;  %v388_v32 = vld [vmem:[#allocation5 + $0x128] sm:$0xff]  ;;  %v386_v36 = vld [vmem:[#allocation5 + $0x118] sm:$0xff]  ;;  %p1159_p10 = pneg %p1158_p4 }
  0x73   : > { %573 = vmatpush.msrb.mxu0 %v438_v63  ;;  %492 = vmatpush.msra.mxu1 %v383_v0  ;;  %v420_v34 = vld [vmem:[#allocation5 + $0x228] sm:$0xff]  ;;  %v418_v37 = vld [vmem:[#allocation5 + $0x218] sm:$0xff] }
  0x74   : > { %551 = vmatpush.msrb.mxu2 %v404_v1  ;;  %493 = vmatmul.f32.vlgmr.msra.gmra.mxu1 %v1567_v2  ;;  %v606_v35 = vld [vmem:[#allocation8 + $0x50] sm:$0xff]  ;;  %v605_v38 = vld [vmem:[#allocation8 + $0x48] sm:$0xff]  ;;  %v604_v41 = vld [vmem:[#allocation8 + $0x40] sm:$0xff] }
  0x75   : > { %574 = vmatpush.msrb.mxu0 %v436_v3  ;;  %632 = vmatpush.msrb.mxu1 %v611_v6  ;;  %v384_v39 = vld [vmem:[#allocation5 + $0x108] sm:$0xff]  ;;  %v601_v44 = vld [vmem:[#allocation8 + $0x28] sm:$0xff]  ;;  %v600_v45 = vld [vmem:[#allocation8 + $0x20] sm:$0xff] }
  0x76   : > { %552 = vmatpush.msrb.mxu2 %v402_v5  ;;  %539 = vmatmul.f32.vlgmr.msra.gmra.mxu3 %v1564_v62  ;;  %v416_v40 = vld [vmem:[#allocation5 + $0x208] sm:$0xff]  ;;  %v625_v46 = vld [vmem:[#allocation8 + $0xe8] sm:$0xff]  ;;  %v624_v49 = vld [vmem:[#allocation8 + $0xe0] sm:$0xff]  ;;  %v443_v62 = vperm.slane %v441_v60, 0 }
  0x77   : > { %575 = vmatpush.msrb.mxu0 %v434_v7  ;;  %633 = vmatpush.msrb.mxu1 %v610_v10  ;;  %v603_v42 = vld [vmem:[#allocation8 + $0x38] sm:$0xff]  ;;  %v602_v43 = vld [vmem:[#allocation8 + $0x30] sm:$0xff]  ;;  %v597_v51 = vld [vmem:[#allocation8 + $0x8] sm:$0xff] }
  0x78   : > { %553 = vmatpush.msrb.mxu2 %v400_v9  ;;  %655 = vmatpush.msrb.mxu3 %v627_v29  ;;  %v599_v47 = vld [vmem:[#allocation8 + $0x18] sm:$0xff]  ;;  %v598_v50 = vld [vmem:[#allocation8 + $0x10] sm:$0xff]  ;;  %v596_v53 = vld [vmem:[#allocation8] sm:$0xff] }
  0x79   : > { %576 = vmatpush.msrb.mxu0 %v432_v11  ;;  %847 = vmatmul.msk.f32.gmra.mxu2 %vm447_vm0, %v1572_v12  ;;  %v622_v52 = vld [vmem:[#allocation8 + $0xd0] sm:$0xff]  ;;  %v621_v54 = vld [vmem:[#allocation8 + $0xc8] sm:$0xff]  ;;  %v620_v55 = vld [vmem:[#allocation8 + $0xc0] sm:$0xff] }
  0x7a   : > { %554 = vmatpush.msrb.mxu2 %v398_v13  ;;  %634 = vmatpush.msrb.mxu1 %v609_v16  ;;  %v619_v56 = vld [vmem:[#allocation8 + $0xb8] sm:$0xff]  ;;  %v618_v57 = vld [vmem:[#allocation8 + $0xb0] sm:$0xff]  ;;  %v617_v58 = vld [vmem:[#allocation8 + $0xa8] sm:$0xff] }
  0x7b   : > { %577 = vmatpush.msrb.mxu0 %v430_v15  ;;  %656 = vmatpush.msrb.mxu3 %v626_v33  ;;  %v616_v59 = vld [vmem:[#allocation8 + $0xa0] sm:$0xff]  ;;  %v615_v61 = vld [vmem:[#allocation8 + $0x98] sm:$0xff]  ;;  %v614_v63 = vld [vmem:[#allocation8 + $0x90] sm:$0xff] }
  0x7c   : > { %555 = vmatpush.msrb.mxu2 %v396_v17  ;;  %473 = vmatmul.f32.gmra.mxu0 %v348_v18  ;;  %v613_v1 = vld [vmem:[#allocation8 + $0x88] sm:$0xff]  ;;  %v612_v5 = vld [vmem:[#allocation8 + $0x80] sm:$0xff]  ;;  %v444_v17 = vperm.slane %v441_v60, 1 }
  0x7d   : > { %578 = vmatpush.msrb.mxu0 %v428_v20  ;;  %496 = vmatmul.f32.gmra.mxu1 %v349_v22 }
  0x7e   : > { %556 = vmatpush.msrb.mxu2 %v394_v21  ;;  %635 = vmatpush.msrb.mxu1 %v608_v27 }
  0x7f   : > { %579 = vmatpush.msrb.mxu0 %v426_v24  ;;  %542 = vmatmul.f32.gmra.mxu3 %v348_v18 }
  0x80   : > { %557 = vmatpush.msrb.mxu2 %v392_v25  ;;  %636 = vmatpush.msrb.mxu1 %v607_v31 }
  0x81   : > { %580 = vmatpush.msrb.mxu0 %v424_v26  ;;  %657 = vmatpush.msrb.mxu3 %v625_v46 }
  0x82   : > { %558 = vmatpush.msrb.mxu2 %v390_v28  ;;  %637 = vmatpush.msrb.mxu1 %v606_v35 }
  0x83   : > { %581 = vmatpush.msrb.mxu0 %v422_v30  ;;  %658 = vmatpush.msrb.mxu3 %v624_v49 }
  0x84   : > { %559 = vmatpush.msrb.mxu2 %v388_v32  ;;  %638 = vmatpush.msrb.mxu1 %v605_v38  ;;  %v1019_v32 = vld [vmem:[%s1695_s8] ss:$0 sm:$0xff]  ;;  %s1160_s8 = scalar_lea.hbm %s1696_s16, 128 }
  0x85   : > { %582 = vmatpush.msrb.mxu0 %v420_v34  ;;  %p1162_p6 = scmp.lt.s32.totalorder %s1160_s8, %s1156_s14 }
  0x86   : > { %560 = vmatpush.msrb.mxu2 %v386_v36  ;;  %639 = vmatpush.msrb.mxu1 %v604_v41 }
  0x87   : > { %583 = vmatpush.msrb.mxu0 %v418_v37  ;;  %p1163_p11 = por %p1162_p6, %p1161_p12 }
  0x88   : > { %561 = vmatpush.msrb.mxu2 %v384_v39  ;;  %640 = vmatpush.msrb.mxu1 %v603_v42 }
  0x89   : > { %562 = vmatmul.f32.vlgmr.msrb.gmra.mxu2 %v1567_v2  ;;  %584 = vmatpush.msrb.mxu0 %v416_v40  ;;  %p1164_p8 = pnand %p1163_p11, %p1159_p10 }
  0x8a   : > { %848 = vmatmul.msk.f32.vlgmr.msrb.gmra.mxu0 %vm447_vm0, %v1559_v48  ;;  %641 = vmatpush.msrb.mxu1 %v602_v43  ;;  %v623_v48 = vld [vmem:[#allocation8 + $0xd8] sm:$0xff] }
  0x8b   : > { %659 = vmatpush.msrb.mxu3 %v623_v48 }
  0x8c   : > { %642 = vmatpush.msrb.mxu1 %v601_v44 }
  0x8d   : > { %660 = vmatpush.msrb.mxu3 %v622_v52 }
  0x8e   : > { %643 = vmatpush.msrb.mxu1 %v600_v45 }
  0x8f   : > { %661 = vmatpush.msrb.mxu3 %v621_v54 }
  0x90   : > { %644 = vmatpush.msrb.mxu1 %v599_v47 }
  0x91   : > { %565 = vmatmul.f32.gmra.mxu2 %v349_v22  ;;  %662 = vmatpush.msrb.mxu3 %v620_v55 }
  0x92   : > { %849 = vmatmul.msk.f32.gmra.mxu0 %vm447_vm0, %v1572_v12  ;;  %645 = vmatpush.msrb.mxu1 %v598_v50 }
  0x93   : > { %663 = vmatpush.msrb.mxu3 %v619_v56 }
  0x94   : > { %646 = vmatpush.msrb.mxu1 %v597_v51 }
  0x95   : > { %664 = vmatpush.msrb.mxu3 %v618_v57 }
  0x96   : > { %647 = vmatpush.msrb.mxu1 %v596_v53 }
  0x97   : > { %665 = vmatpush.msrb.mxu3 %v617_v58 }
  0x99   : > { %666 = vmatpush.msrb.mxu3 %v616_v59 }
  0x9b   : > { %667 = vmatpush.msrb.mxu3 %v615_v61 }
  0x9d   : > { %668 = vmatpush.msrb.mxu3 %v614_v63 }
  0x9f   : > { %669 = vmatpush.msrb.mxu3 %v613_v1 }
  0xa1   : > { %670 = vmatpush.msrb.mxu3 %v612_v5 }
  0xee   : > { %v517_v4 = vpop.f32.mrf.mxu2 }
  0xef   : > { %v471_v0 = vpop.f32.mrf.mxu0 }
  0xf0   : > { %v472_v2 = vadd.f32 %v471_v0, %v443_v62 }
  0xf1   : > { %v494_v3 = vpop.f32.mrf.mxu1 }
  0xf2   : > { %v495_v6 = vadd.f32 %v494_v3, %v472_v2 }
  0xf4   : > { %v518_v7 = vadd.f32 %v517_v4, %v495_v6 }
  0xf6   : > { %v592_v8 = vmax.f32 %v518_v7, 0.0 }
  0xf8   : > { %648 = vmatmul.f32.vlgmr.msrb.gmra.mxu1 %v592_v8 }
  0xf9   : > { %v474_v9 = vpop.f32.mrf.mxu0  ;;  %v540_v16 = vpop.f32.mrf.mxu3 }
  0xfa   : > { %v475_v10 = vadd.f32 %v474_v9, %v443_v62  ;;  %v497_v11 = vpop.f32.mrf.mxu1  ;;  %v541_v18 = vadd.f32 %v540_v16, %v444_v17 }
  0xfc   : > { %v498_v12 = vadd.f32 %v497_v11, %v475_v10  ;;  %v520_v13 = vpop.f32.mrf.mxu2 }
  0xfe   : > { %v521_v14 = vadd.f32 %v520_v13, %v498_v12 }
 0x100   : > { %v594_v15 = vmax.f32 %v521_v14, 0.0 }
 0x102   : > { %651 = vmatmul.f32.gmra.mxu1 %v594_v15  ;;  %v543_v22 = vpop.f32.mrf.mxu3 }
 0x103   : > { %v544_v25 = vadd.f32 %v543_v22, %v444_v17 }
 0x107   : > { %v586_v19 = vpop.f32.mrf.mxu0 }
 0x10c   : > { %v563_v20 = vpop.f32.mrf.mxu2 }
 0x10d   : > { %v564_v21 = vadd.f32 %v563_v20, %v541_v18 }
 0x10f   : > { %v587_v23 = vadd.f32 %v586_v19, %v564_v21  ;;  %v589_v27 = vpop.f32.mrf.mxu0 }
 0x111   : > { %v593_v24 = vmax.f32 %v587_v23, 0.0 }
 0x113   : > { %671 = vmatmul.f32.vlgmr.msrb.gmra.mxu3 %v593_v24 }
 0x114   : > { %v566_v26 = vpop.f32.mrf.mxu2 }
 0x115   : > { %v567_v28 = vadd.f32 %v566_v26, %v544_v25 }
 0x117   : > { %v590_v29 = vadd.f32 %v589_v27, %v567_v28 }
 0x119   : > { %v595_v30 = vmax.f32 %v590_v29, 0.0 }
 0x11b   : > { %674 = vmatmul.f32.gmra.mxu3 %v595_v30 }
 0x175   : > { %v649_v31 = vpop.f32.mrf.mxu1 }
 0x176   : > { %v650_v33 = vadd.f32 %v1019_v32, %v649_v31 }
 0x17f   : > { %v652_v36 = vpop.f32.mrf.mxu1 }
 0x180   : > { %v653_v37 = vadd.f32 %v1019_v32, %v652_v36 }
 0x196   : > { %v672_v34 = vpop.f32.mrf.mxu3 }
 0x197   : > { %v673_v35 = vadd.f32 %v672_v34, %v650_v33 }
 0x199   : > { %678 = vst [vmem:[%s341_s30] sm:$0xff] %v673_v35 }
 0x19e   : > { %v675_v38 = vpop.f32.mrf.mxu3 }
 0x19f   : > { %v676_v39 = vadd.f32 %v675_v38, %v653_v37 }
 0x1a1   : > { %679 = vst [vmem:[%s341_s30 + $0x8] sm:$0xff] %v676_v39 }
 0x1a2   : > { %1167 = shalt.err (!%p1164_p8)
}
 0x1a3   : > { %s1308_s21 = smov 128   ;;  %s1309_s9 = smov 8  }
 0x1a4   : > { %871 = dma.vmem_to_hbm [thread:$0]  (%p1504_p3), %s697_s1, 256, %s699_s7, %s681_s12, %s1308_s21, %s1308_s21, %s1309_s9  }
 0x1a5 PF: > { %p896_p13 = scmp.ge.s32.totalorder %s1298_s6, 2  ;;  %s713_s24 = sand.u32 1, %s1246_s18  }
 0x1a6   : > { %s714_s28 = scalar_lea.sflag [#allocation4], %s713_s24 }
 0x1a7   : > { %p888_p0 = pnand %p896_p13, %p1520_p9 }
 0x1a9   : > { %p889_p5 = pneg %p888_p0 }
 0x1ab   : > { %1241 = dma.done.wait (%p889_p5), %s714_s28, 256  }
 0x1ac   : > { %1243 = vsyncadd (%p889_p5), %s714_s28, 4294967040  ;;  %s22_s6 = sadd.s32 1, %s1298_s6   ;;  %s1699_s30 = sld [smem:[#allocation20_spill]] }
 0x1ad   : > { %p1610_p7 = scmp.ge.s32.totalorder %s22_s6, 10   ;;  %s1700_s28 = sld [smem:[#allocation17_spill]] }
 0x1ae   : > { %s1701_s11 = sld [smem:[#allocation18_spill]]  ;;  %s1703_s18 = smov %s1250_s19 }
 0x1af   : > { %s1702_s1 = sld [smem:[#allocation19_spill]]  ;;  %s1704_s19 = smov %s1254_s20 }
 0x1b0   : > { %s1705_s20 = smov %s1514_s0  ;;  %s1706_s21 = smov %s1262_s22 }
 0x1b1   : > { %s1707_s22 = smov %s1266_s23  ;;  %s1709_s24 = smov %s1274_s25 }
 0x1b2   : > { %s1708_s23 = smov %s1699_s30  ;;  %s1710_s25 = smov %s1278_s26 }
 0x1b3   : > { %s1711_s26 = smov %s1511_s17  ;;  %s1712_s27 = smov %s1290_s29 }
 0x1b4   : > { %s1713_s29 = smov %s1701_s11  ;;  %21 = sbr.rel (!%p1610_p7) target bundleno = 17 (0x11), region = 104 }
 0x1b5   : > { %s1714_s30 = smov %s1702_s1 }
 0x1b9   :  { %720 = vsyncpa [#allocation3], 1 }
 0x1ba   :  { %722 = vsyncpa [#allocation3 + $0x1], 1 }
 0x1bb   :  { %723 = vsyncpa [#allocation6], 1 }
 0x1bc   :  { %724 = vsyncpa [#allocation4], 1 }
 0x1bd   :  { %726 = vsyncpa [#allocation4 + $0x1], 1 }

</bundles_post_ra>
